<compile_context>
chip_gen: v5e
topology: v5e:2x2
jax: 0.10.0
libtpu: 0.0.40
codegen_flags: <defaults>
</compile_context>

<pallas_src>
import functools

import jax
import jax.numpy as jnp
from jax import lax
from jax.experimental import pallas as pl
from jax.experimental.pallas import tpu as pltpu

EPS = 1e-5
LANE = 128


def _bn_relu_dropout_kernel(seed_ref, x_ref, gamma_ref, beta_ref, o_ref,
                            *, dropout_rate: float, f_padded: int):
    x = x_ref[...].astype(jnp.float32)              # (N, TILE_F)
    gamma = gamma_ref[...].astype(jnp.float32)      # (1, TILE_F)
    beta = beta_ref[...].astype(jnp.float32)        # (1, TILE_F)

    # BatchNorm1d (training): batch statistics over axis 0, biased variance.
    mean = jnp.mean(x, axis=0, keepdims=True)
    centered = x - mean
    var = jnp.mean(centered * centered, axis=0, keepdims=True)
    inv_std = lax.rsqrt(var + EPS)                  # (1, TILE_F)

    if dropout_rate > 0.0:
        inv_keep = 1.0 / (1.0 - dropout_rate)
        # Fold gamma, inv_std and the dropout scale into one scale / shift.
        scale = gamma * inv_std * inv_keep          # (1, TILE_F)
        shift = beta * inv_keep                     # (1, TILE_F)
        y = centered * scale + shift                # (N, TILE_F)

        # Counter-based hash -> uint32 random bits per element, then an
        # integer-threshold keep test (no float convert / shift / multiply).
        tile_f = x.shape[1]
        col0 = pl.program_id(0) * tile_f
        rows = lax.broadcasted_iota(jnp.int32, x.shape, 0).astype(jnp.uint32)
        cols = (lax.broadcasted_iota(jnp.int32, x.shape, 1)
                + col0).astype(jnp.uint32)
        elem = rows * jnp.uint32(f_padded) + cols
        h = elem + seed_ref[0].astype(jnp.uint32) * jnp.uint32(0x9E3779B9)
        # murmur3 finalizer
        h = h ^ (h >> 16)
        h = h * jnp.uint32(0x85EBCA6B)
        h = h ^ (h >> 13)
        h = h * jnp.uint32(0xC2B2AE35)
        h = h ^ (h >> 16)

        thresh = jnp.uint32(min(int(round(dropout_rate * 4294967296.0)),
                                4294967295))
        keep = h >= thresh                          # P(drop) = dropout_rate
        # ReLU + dropout in one select (inv_keep > 0 so ReLU commutes with it).
        o_ref[...] = jnp.where(keep & (y > 0.0), y, 0.0).astype(o_ref.dtype)
    else:
        y = centered * (gamma * inv_std) + beta
        o_ref[...] = jnp.maximum(y, 0.0).astype(o_ref.dtype)


def _pick_tile_f(n: int, f: int) -> int:
    """Largest multiple of 128 (<=512) keeping one (N, TILE_F) f32 buffer <=~6MiB."""
    budget_elems = (6 * 1024 * 1024) // 4
    tile = max(LANE, min(512, (budget_elems // max(n, 1)) // LANE * LANE))
    f_lane = pl.cdiv(f, LANE) * LANE
    return min(tile, f_lane)


def batchnorm_dropout(x, gamma, beta, seed, dropout_rate):
    """x: (N, F) float32; gamma/beta: (F,); seed: int32 array of shape (1,)."""
    n, f = x.shape
    dropout_rate = float(dropout_rate)

    if dropout_rate >= 1.0:        # PyTorch Dropout(p=1) zeroes everything.
        return jnp.zeros_like(x)

    tile_f = _pick_tile_f(n, f)
    f_padded = pl.cdiv(f, tile_f) * tile_f
    # TODO(synk): for very large N (tall-skinny), switch to an N-tiled
    # sum/sum-of-squares two-pass scheme so VMEM stays bounded.

    if f_padded != f:
        x_p = jnp.pad(x, ((0, 0), (0, f_padded - f)))
        gamma_p = jnp.pad(gamma, (0, f_padded - f))
        beta_p = jnp.pad(beta, (0, f_padded - f))
    else:
        x_p, gamma_p, beta_p = x, gamma, beta

    gamma2d = gamma_p.reshape(1, f_padded)
    beta2d = beta_p.reshape(1, f_padded)

    kernel = functools.partial(_bn_relu_dropout_kernel,
                               dropout_rate=dropout_rate,
                               f_padded=f_padded)

    grid = (f_padded // tile_f,)

    out = pl.pallas_call(
        kernel,
        out_shape=jax.ShapeDtypeStruct((n, f_padded), x.dtype),
        grid_spec=pltpu.PrefetchScalarGridSpec(
            num_scalar_prefetch=1,              # seed lands in SMEM
            grid=grid,
            in_specs=[
                pl.BlockSpec((n, tile_f), lambda i, s: (0, i)),
                pl.BlockSpec((1, tile_f), lambda i, s: (0, i)),
                pl.BlockSpec((1, tile_f), lambda i, s: (0, i)),
            ],
            out_specs=pl.BlockSpec((n, tile_f), lambda i, s: (0, i)),
        ),
        compiler_params=pltpu.CompilerParams(
            dimension_semantics=("parallel",)),
        cost_estimate=pl.CostEstimate(
            flops=10 * n * f_padded,
            transcendentals=f_padded,
            bytes_accessed=2 * n * f_padded * 4 + 2 * f_padded * 4),
    )(seed, x_p, gamma2d, beta2d)

    return out[:, :f] if f_padded != f else out


def batchnorm_dropout_ref(x, gamma, beta):
    """Reference BN(training) + ReLU (dropout mask checked separately)."""
    mean = jnp.mean(x, axis=0, keepdims=True)
    var = jnp.mean((x - mean) ** 2, axis=0, keepdims=True)
    y = (x - mean) / jnp.sqrt(var + EPS) * gamma.reshape(1, -1) + beta.reshape(1, -1)
    return jnp.maximum(y, 0.0)


if __name__ == "__main__":
    key = jax.random.PRNGKey(0)

    N, F = 8, 32            # batch=8, inputSize=32
    dropout_rate = 0.1

    x = jax.random.normal(key, (N, F), dtype=jnp.float32)

    # Deterministic affine params (BatchNorm1d gamma/beta).
    gamma = 1.0 + 0.01 * jnp.arange(F, dtype=jnp.float32)
    beta = 0.05 * jnp.arange(F, dtype=jnp.float32)

    seed = jnp.array([1234], dtype=jnp.int32)

    ref = batchnorm_dropout_ref(x, gamma, beta)

    # 1) No-dropout path: must match BN+ReLU reference exactly (up to fp noise).
    out0 = jax.block_until_ready(batchnorm_dropout(x, gamma, beta, seed, 0.0))
    assert out0.shape == (N, F) and out0.dtype == jnp.float32
    assert jnp.allclose(out0, ref, atol=1e-4, rtol=1e-4)

    # 2) Dropout path: every nonzero output equals (BN+ReLU)/(1-p); the rest are 0.
    out = jax.block_until_ready(
        batchnorm_dropout(x, gamma, beta, seed, dropout_rate))
    assert out.shape == (N, F) and out.dtype == jnp.float32
    kept = out != 0.0
    scaled_ref = ref / (1.0 - dropout_rate)
    assert jnp.allclose(jnp.where(kept, out, 0.0),
                        jnp.where(kept, scaled_ref, 0.0),
                        atol=1e-4, rtol=1e-4)

    print("KERNEL_OK")
</pallas_src>

<mosaic_0001>
module attributes {stable_mosaic.version = 11 : i64} {
  func.func @_bn_relu_dropout_kernel(%arg0: i32, %arg1: memref<1xi32, #tpu.memory_space<smem>>, %arg2: memref<8x128xf32, #tpu.memory_space<vmem>>, %arg3: memref<1x128xf32, #tpu.memory_space<vmem>>, %arg4: memref<1x128xf32, #tpu.memory_space<vmem>>, %arg5: memref<8x128xf32, #tpu.memory_space<vmem>>) attributes {dimension_semantics = [#tpu.dimension_semantics<parallel>], iteration_bounds = array<i64: 1>, scalar_prefetch = 1 : i64, scratch_operands = 0 : i64, tpu.core_type = #tpu.core_type<tc>, window_params = [{transform_indices = @transform_0, window_bounds = array<i64: 8, 128>}, {transform_indices = @transform_1, window_bounds = array<i64: 1, 128>}, {transform_indices = @transform_2, window_bounds = array<i64: 1, 128>}, {transform_indices = @transform_3, window_bounds = array<i64: 8, 128>}]} {
    %c0 = arith.constant 0 : index
    %c0_0 = arith.constant 0 : index
    %0 = vector.load %arg2[%c0, %c0_0] : memref<8x128xf32, #tpu.memory_space<vmem>>, vector<8x128xf32>
    %c0_1 = arith.constant 0 : index
    %c0_2 = arith.constant 0 : index
    %1 = vector.load %arg3[%c0_1, %c0_2] : memref<1x128xf32, #tpu.memory_space<vmem>>, vector<1x128xf32>
    %c0_3 = arith.constant 0 : index
    %c0_4 = arith.constant 0 : index
    %2 = vector.load %arg4[%c0_3, %c0_4] : memref<1x128xf32, #tpu.memory_space<vmem>>, vector<1x128xf32>
    %cst = arith.constant dense<0.000000e+00> : vector<128xf32>
    %3 = vector.multi_reduction <add>, %0, %cst [0] : vector<8x128xf32> to vector<128xf32>
    %4 = vector.shape_cast %3 : vector<128xf32> to vector<1x128xf32>
    %cst_5 = arith.constant 8.000000e+00 : f32
    %5 = vector.broadcast %cst_5 : f32 to vector<1x128xf32>
    %6 = arith.divf %4, %5 : vector<1x128xf32>
    %7 = vector.broadcast %6 : vector<1x128xf32> to vector<8x128xf32>
    %8 = arith.subf %0, %7 : vector<8x128xf32>
    %9 = arith.mulf %8, %8 : vector<8x128xf32>
    %cst_6 = arith.constant dense<0.000000e+00> : vector<128xf32>
    %10 = vector.multi_reduction <add>, %9, %cst_6 [0] : vector<8x128xf32> to vector<128xf32>
    %11 = vector.shape_cast %10 : vector<128xf32> to vector<1x128xf32>
    %cst_7 = arith.constant 8.000000e+00 : f32
    %12 = vector.broadcast %cst_7 : f32 to vector<1x128xf32>
    %13 = arith.divf %11, %12 : vector<1x128xf32>
    %cst_8 = arith.constant 9.99999974E-6 : f32
    %14 = vector.broadcast %cst_8 : f32 to vector<1x128xf32>
    %15 = arith.addf %13, %14 : vector<1x128xf32>
    %16 = math.rsqrt %15 : vector<1x128xf32>
    %17 = arith.mulf %1, %16 : vector<1x128xf32>
    %18 = vector.broadcast %17 : vector<1x128xf32> to vector<8x128xf32>
    %19 = arith.mulf %8, %18 : vector<8x128xf32>
    %20 = vector.broadcast %2 : vector<1x128xf32> to vector<8x128xf32>
    %21 = arith.addf %19, %20 : vector<8x128xf32>
    %cst_9 = arith.constant 0.000000e+00 : f32
    %22 = vector.broadcast %cst_9 : f32 to vector<8x128xf32>
    %23 = arith.maximumf %21, %22 : vector<8x128xf32>
    %c0_10 = arith.constant 0 : index
    %c0_11 = arith.constant 0 : index
    %24 = vector.load %arg5[%c0_10, %c0_11] : memref<8x128xf32, #tpu.memory_space<vmem>>, vector<8x128xf32>
    tpu.vector_store %arg5[%c0_10, %c0_11], %23 {strides = array<i32>} : memref<8x128xf32, #tpu.memory_space<vmem>>, vector<8x128xf32>,
    return
  }
  func.func @transform_0(%arg0: i32, %arg1: memref<1xi32, #tpu.memory_space<smem>>) -> (i32, i32) {
    %c0_i32 = arith.constant 0 : i32
    %c0_i32_0 = arith.constant 0 : i32
    return %c0_i32, %arg0 : i32, i32
  }
  func.func @transform_1(%arg0: i32, %arg1: memref<1xi32, #tpu.memory_space<smem>>) -> (i32, i32) {
    %c0_i32 = arith.constant 0 : i32
    %c0_i32_0 = arith.constant 0 : i32
    return %c0_i32, %arg0 : i32, i32
  }
  func.func @transform_2(%arg0: i32, %arg1: memref<1xi32, #tpu.memory_space<smem>>) -> (i32, i32) {
    %c0_i32 = arith.constant 0 : i32
    %c0_i32_0 = arith.constant 0 : i32
    return %c0_i32, %arg0 : i32, i32
  }
  func.func @transform_3(%arg0: i32, %arg1: memref<1xi32, #tpu.memory_space<smem>>) -> (i32, i32) {
    %c0_i32 = arith.constant 0 : i32
    %c0_i32_0 = arith.constant 0 : i32
    return %c0_i32, %arg0 : i32, i32
  }
}

</mosaic_0001>

<bundles_post_ra>
// kernel: tpu_custom_call.1
= control target key start
LH: loop header
LB: loop body
LE: loop exit
PB: predicated region body
PF: predicated region fallthrough
CT: control target
= control target key end

     0   :  { %10 = vsyncpa [#allocation5], 0  ;;  %s196_s0 = inlined_call_operand.<no memory space> [shape: s32[1], index: 0, kind: input, shape index: {}]   ;;  %s197_s1 = inlined_call_operand.hbm [shape: f32[8,128], index: 1, kind: input, shape index: {}]   ;;  %s198_s2 = inlined_call_operand.vmem [shape: f32[1,128], index: 2, kind: input, shape index: {}]   ;;  %s199_s3 = inlined_call_operand.vmem [shape: f32[1,128], index: 3, kind: input, shape index: {}]   ;;  %s200_s4 = inlined_call_operand.hbm [shape: f32[8,128], index: 4, kind: output, shape index: {}]  }
   0x1   :  { %11 = vsyncpa [#allocation6], 0  ;;  %s17_s17 = sshll.u32 %s197_s1, 4  ;;  %s156_s0 = smov [#allocation4]   ;;  %s18_s17 = int_to_ptr.hbm [resolvable:$true] %s17_s17 }
   0x2   :  { %s19_s18 = sshll.u32 %s156_s0, 4  ;;  %s20_s18 = int_to_ptr.vmem [resolvable:$true] %s19_s18 }
   0x3   :  { %22 = dma.hbm_to_vmem [thread:$0]  %s18_s17, 128, %s20_s18, [#allocation5]  }
   0x4   :  { %152 = dma.done.wait [#allocation5], 128  }
   0x5   :  { %153 = vsyncadd [#allocation5], 4294967168  ;;  %v157_v0 = vmov 8.0   ;;  %v31_v2 = vld [vmem:[#allocation4] sm:$0xff]  ;;  %s158_s22 = smov [#allocation7]   ;;  %s86_s26 = sshll.u32 %s200_s4, 4  ;;  %s87_s26 = int_to_ptr.hbm [resolvable:$true] %s86_s26 }
   0x6   :  { %100 = vrcp.f32 %v157_v0  ;;  %v34_v3 = vrot.slane %v31_v2, 4  ;;  %v32_v30 = vld [vmem:[%s198_s2] sm:$0x1]  ;;  %s84_s23 = sshll.u32 %s158_s22, 4  ;;  %s85_s23 = int_to_ptr.vmem [resolvable:$true] %s84_s23 }
   0x7   :  { %v99_v35 = vld [vmem:[%s199_s3] ss:$0 sm:$0xff] }
   0x8   :  { %v35_v5 = vadd.f32 %v34_v3, %v31_v2 }
   0xa   :  { %v36_v7 = vrot.slane %v35_v5, 2 }
   0xc   :  { %v101_v1 = vpop.eup %100  ;;  %v37_v9 = vadd.f32 %v36_v7, %v35_v5 }
   0xd   :  { %v41_v4 = vmul.f32 8.0, %v101_v1  ;;  %vm45_vm0 = vweird.f32 %v101_v1 }
   0xe   :  { %v38_v11 = vrot.slane %v37_v9, 1 }
   0xf   :  { %v42_v6 = vsub.f32 1.0, %v41_v4 }
  0x10   :  { %v39_v13 = vadd.f32 %v38_v11, %v37_v9 }
  0x11   :  { %v43_v8 = vmul.f32 %v101_v1, %v42_v6 }
  0x13   :  { %v44_v10 = vadd.f32 %v101_v1, %v43_v8 }
  0x15   :  { %v46_v12 = vsel %vm45_vm0, %v101_v1, %v44_v10 }
  0x16   :  { %v47_v14 = vmul.f32 %v46_v12, %v39_v13 }
  0x18   :  { %v48_v15 = vsub.f32 %v31_v2, %v47_v14 }
  0x1a   :  { %v49_v16 = vmul.f32 %v48_v15, %v48_v15 }
  0x1c   :  { %v50_v17 = vrot.slane %v49_v16, 4 }
  0x1e   :  { %v51_v18 = vadd.f32 %v50_v17, %v49_v16 }
  0x20   :  { %v52_v19 = vrot.slane %v51_v18, 2 }
  0x22   :  { %v53_v20 = vadd.f32 %v52_v19, %v51_v18 }
  0x24   :  { %v54_v21 = vrot.slane %v53_v20, 1 }
  0x26   :  { %v55_v22 = vadd.f32 %v54_v21, %v53_v20 }
  0x28   :  { %v56_v23 = vmul.f32 %v55_v22, %v46_v12 }
  0x2a   :  { %v57_v24 = vadd.f32 1e-05, %v56_v23 }
  0x2c   :  { %102 = vrsqrt.f32 %v57_v24  ;;  %vm64_vm1 = vweird.f32 %v57_v24 }
  0x32   :  { %v103_v25 = vpop.eup %102 }
  0x33   :  { %v59_v26 = vmul.f32 %v103_v25, %v57_v24  ;;  %vm65_vm2 = vweird.f32 %v103_v25 }
  0x34   :  { %vm66_vm3 = vmor %vm64_vm1, %vm65_vm2 }
  0x35   :  { %v60_v27 = vmul.f32 %v103_v25, %v59_v26 }
  0x37   :  { %v61_v28 = vmul.f32 0.5, %v60_v27 }
  0x39   :  { %v62_v29 = vsub.f32 1.5, %v61_v28 }
  0x3b   :  { %v63_v31 = vmul.f32 %v103_v25, %v62_v29 }
  0x3d   :  { %v67_v32 = vsel %vm66_vm3, %v103_v25, %v63_v31 }
  0x3e   :  { %v68_v33 = vmul.f32 %v67_v32, %v32_v30 }
  0x40   :  { %v70_v34 = vperm.slane %v68_v33, 0 }
  0x42   :  { %v72_v36 = vmul.f32 %v70_v34, %v48_v15 }
  0x44   :  { %v76_v37 = vadd.f32 %v99_v35, %v72_v36 }
  0x46   :  { %v77_v38 = vmax.f32 %v76_v37, 0.0 }
  0x48   :  { %78 = vst [vmem:[#allocation7] sm:$0xff] %v77_v38 }
  0x49   :  { %89 = dma.vmem_to_hbm [thread:$0]  %s85_s23, 128, %s87_s26, [#allocation6]  }
  0x4a   :  { %154 = dma.done.wait [#allocation6], 128  }
  0x4b   :  { %155 = vsyncadd [#allocation6], 4294967168 }
  0x4c   :  { %94 = vsyncpa [#allocation5], 1 }
  0x4d   :  { %95 = vsyncpa [#allocation6], 1 }

</bundles_post_ra>
